<compile_context>
chip_gen: v7x
topology: tpu7x:2x2x1
jax: 0.10.0
libtpu: 0.0.40
codegen_flags: <defaults>
</compile_context>

<pallas_src>
import jax
import jax.numpy as jnp
from jax.experimental import pallas as pl
from jax.experimental.pallas import tpu as pltpu


# ---------------------------------------------------------------------------
# Pallas kernel: assemble [prefix | ctx | suffix] for BOTH halves per step.
# ---------------------------------------------------------------------------
def _assemble_kernel(prefix_pos_ref, ctx_pos_ref, suffix_pos_ref,
                     prefix_neg_ref, ctx_neg_ref, suffix_neg_ref,
                     out_ref):
    """out block is (2, tp, seq, D): index 0 = positive half, 1 = negative.

    Three static slice stores per half (token-axis offsets 0, 1, 1+n_ctx):
    no concatenate temporary; Mosaic lowers them to (possibly masked)
    sublane stores into the resident output block.
    """
    n_ctx = ctx_pos_ref.shape[1]
    # Positive half.
    out_ref[0, :, 0:1, :] = prefix_pos_ref[...]
    out_ref[0, :, 1:1 + n_ctx, :] = ctx_pos_ref[...]
    out_ref[0, :, 1 + n_ctx:, :] = suffix_pos_ref[...]
    # Negative half.
    out_ref[1, :, 0:1, :] = prefix_neg_ref[...]
    out_ref[1, :, 1:1 + n_ctx, :] = ctx_neg_ref[...]
    out_ref[1, :, 1 + n_ctx:, :] = suffix_neg_ref[...]


def _prompts_per_block(n_half, bytes_per_prompt,
                       vmem_budget_bytes=12 * 1024 * 1024):
    """Budget-driven prompts-per-block (no divisibility requirement).

    Per grid step the resident working set is ~ pos-in + neg-in + 2-half-out
    = 4 * tp * bytes_per_prompt, double-buffered by the pipeline -> 8x.
    A 12 MiB budget stays under the *default* scoped-VMEM limits on all
    generations (v5e 16 MiB, v6e 32 MiB, v7x 32 MiB of 64 MiB physical) with
    headroom for Mosaic internal scratch, while keeping the kernel near the
    HBM roofline for any realistic n_half.
    """
    tp = max(1, int(vmem_budget_bytes) // (8 * int(bytes_per_prompt)))
    return min(tp, n_half)


def assemble_prompts(prefix_pos, ctx_pos, suffix_pos,
                     prefix_neg, ctx_neg, suffix_neg,
                     *, vmem_budget_bytes=12 * 1024 * 1024):
    """Inputs are (N_half, tokens, D) segments; returns (2*N_half, seq, D)."""
    n_half, _, d = prefix_pos.shape
    n_ctx = ctx_pos.shape[1]
    n_suf = suffix_pos.shape[1]
    seq_len = 1 + n_ctx + n_suf
    dtype = ctx_pos.dtype

    # The kernel assembles both halves per step, so pos/neg segment shapes must
    # match (true for this module: normal_num == anormaly_num == 1).
    # TODO(synk): general normal_num != anormaly_num would need two kernel calls.
    assert prefix_neg.shape == prefix_pos.shape
    assert ctx_neg.shape == ctx_pos.shape
    assert suffix_neg.shape == suffix_pos.shape
    for a in (prefix_pos, suffix_pos, prefix_neg, ctx_neg, suffix_neg):
        assert a.dtype == dtype, "all prompt segments must share one dtype"
    # Perf note: keep D (the lane axis) a multiple of 128 for unmasked vst;
    # the kernel remains correct otherwise since D equals the full array extent.

    itemsize = jnp.dtype(dtype).itemsize
    bytes_per_prompt = seq_len * d * itemsize
    tp = _prompts_per_block(n_half, bytes_per_prompt, vmem_budget_bytes)
    nb = pl.cdiv(n_half, tp)      # partial last block is masked by Pallas

    def seg_spec(toks):
        return pl.BlockSpec((tp, toks, d), lambda j: (j, 0, 0))

    total_payload = 2 * n_half * bytes_per_prompt   # bytes written (== read)

    out = pl.pallas_call(
        _assemble_kernel,
        out_shape=jax.ShapeDtypeStruct((2, n_half, seq_len, d), dtype),
        grid=(nb,),
        in_specs=[seg_spec(1), seg_spec(n_ctx), seg_spec(n_suf),
                  seg_spec(1), seg_spec(n_ctx), seg_spec(n_suf)],
        out_specs=pl.BlockSpec((2, tp, seq_len, d), lambda j: (0, j, 0, 0)),
        compiler_params=pltpu.CompilerParams(
            # Overhead/bandwidth-bound copy: do not megacore-shard it on v7x,
            # that would just duplicate the tiny DMAs on both TensorCores.
            dimension_semantics=("arbitrary",)),
        cost_estimate=pl.CostEstimate(
            flops=0, transcendentals=0, bytes_accessed=2 * total_payload),
    )(prefix_pos, ctx_pos, suffix_pos, prefix_neg, ctx_neg, suffix_neg)

    # Free reshape of contiguous leading dims: [pos prompts..., neg prompts...]
    return out.reshape(2 * n_half, seq_len, d)


# ---------------------------------------------------------------------------
# "Module": deterministic parameter / buffer construction (synthetic weights,
# no checkpoint) matching the shapes implied by __init__.
# ---------------------------------------------------------------------------
class PromptLearnerParams:
    def __init__(self, key, *, n_cls=1, normal_num=1, anormaly_num=1,
                 n_ctx=8, context_length=77, ctx_dim=128,
                 text_encoder_n_ctx=4, compound_prompts_depth=2,
                 dtype=jnp.float32):
        self.n_cls = n_cls
        self.normal_num = normal_num
        self.anormaly_num = anormaly_num
        self.n_ctx_pos = n_ctx
        self.n_ctx_neg = n_ctx
        self.context_length = context_length
        self.ctx_dim = ctx_dim

        n_keys = 6 + max(1, compound_prompts_depth - 1)
        ks = jax.random.split(key, n_keys)
        n_suffix = context_length - 1 - n_ctx

        # Learnable context vectors (std=0.02 normal init, like nn.init.normal_).
        self.ctx_pos = 0.02 * jax.random.normal(
            ks[0], (n_cls, normal_num, n_ctx, ctx_dim), dtype)
        self.ctx_neg = 0.02 * jax.random.normal(
            ks[1], (n_cls, anormaly_num, n_ctx, ctx_dim), dtype)

        # Frozen buffers: stand-ins for clip_model.token_embedding(...) outputs.
        self.token_prefix_pos = jax.random.normal(
            ks[2], (n_cls, normal_num, 1, ctx_dim), dtype)
        self.token_suffix_pos = jax.random.normal(
            ks[3], (n_cls, normal_num, n_suffix, ctx_dim), dtype)
        self.token_prefix_neg = jax.random.normal(
            ks[4], (n_cls, anormaly_num, 1, ctx_dim), dtype)
        self.token_suffix_neg = jax.random.normal(
            ks[5], (n_cls, anormaly_num, n_suffix, ctx_dim), dtype)

        # Tokenized prompt ids (int), deterministic stand-ins for tokenize(...).
        self.tokenized_prompts_pos = (
            jnp.arange(n_cls * normal_num * context_length, dtype=jnp.int32)
            .reshape(n_cls, normal_num, context_length) % 49408)
        self.tokenized_prompts_neg = (
            (jnp.arange(n_cls * anormaly_num * context_length, dtype=jnp.int32)
             + 7).reshape(n_cls, anormaly_num, context_length) % 49408)

        # Learnable deep-text prompts (compound_prompts_depth - 1 tensors).
        self.compound_prompts_text = [
            0.02 * jax.random.normal(ks[6 + i],
                                     (text_encoder_n_ctx, ctx_dim), dtype)
            for i in range(compound_prompts_depth - 1)
        ]
        # TODO(synk): compound_prompt_projections (Linear ctx_dim->896) are
        # created in __init__ but never used in forward, so they are omitted.


def prompt_learner_forward(p: PromptLearnerParams):
    d = p.ctx_dim

    # Only leading-dim reshapes here (free); no payload concatenation in the
    # wrapper — the Pallas kernel consumes the pos/neg segments directly.
    prefix_pos = p.token_prefix_pos.reshape(-1, 1, d)
    ctx_pos = p.ctx_pos.reshape(-1, p.n_ctx_pos, d)
    suffix_pos = p.token_suffix_pos.reshape(-1, p.token_suffix_pos.shape[2], d)
    prefix_neg = p.token_prefix_neg.reshape(-1, 1, d)
    ctx_neg = p.ctx_neg.reshape(-1, p.n_ctx_neg, d)
    suffix_neg = p.token_suffix_neg.reshape(-1, p.token_suffix_neg.shape[2], d)

    prompts = assemble_prompts(prefix_pos, ctx_pos, suffix_pos,
                               prefix_neg, ctx_neg, suffix_neg)

    # Glue: int token-id concat (tiny, no vector compute worth a kernel).
    tokenized_prompts = jnp.concatenate(
        [p.tokenized_prompts_pos.reshape(-1, p.context_length),
         p.tokenized_prompts_neg.reshape(-1, p.context_length)], axis=0)

    return prompts, tokenized_prompts, p.compound_prompts_text


def _reference_forward(p: PromptLearnerParams):
    """Pure jnp reference mirroring the PyTorch forward."""
    prompts_pos = jnp.concatenate(
        [p.token_prefix_pos, p.ctx_pos, p.token_suffix_pos], axis=2)
    prompts_neg = jnp.concatenate(
        [p.token_prefix_neg, p.ctx_neg, p.token_suffix_neg], axis=2)
    l, d = prompts_pos.shape[2], prompts_pos.shape[3]
    prompts = jnp.concatenate(
        [prompts_pos.reshape(-1, l, d), prompts_neg.reshape(-1, l, d)], axis=0)
    tok = jnp.concatenate(
        [p.tokenized_prompts_pos.reshape(-1, p.context_length),
         p.tokenized_prompts_neg.reshape(-1, p.context_length)], axis=0)
    return prompts, tok


if __name__ == "__main__":
    key = jax.random.PRNGKey(0)

    # --- 1) Default module configuration (n_half == 1, single grid step). ---
    params = PromptLearnerParams(
        key,
        n_cls=1, normal_num=1, anormaly_num=1,
        n_ctx=8,                # design_details['Prompt_length']
        context_length=77,      # CLIP context length
        ctx_dim=128,            # small lane-dense stand-in for ln_final width
        text_encoder_n_ctx=4,   # design_details['learnabel_text_embedding_length']
        compound_prompts_depth=2,
    )

    prompts, tokenized_prompts, compound = prompt_learner_forward(params)
    prompts = jax.block_until_ready(prompts)
    tokenized_prompts = jax.block_until_ready(tokenized_prompts)

    ref_prompts, ref_tok = _reference_forward(params)
    assert prompts.shape == (2, 77, 128), prompts.shape
    assert tokenized_prompts.shape == (2, 77), tokenized_prompts.shape
    assert len(compound) == 1 and compound[0].shape == (4, 128)
    assert jnp.array_equal(tokenized_prompts, ref_tok)
    assert jnp.array_equal(prompts, ref_prompts)

    # --- 2) Multi-block path: n_half = 3 with a tiny VMEM budget forcing
    #        tp = 2 -> nb = 2 grid steps with a masked partial last block. ---
    params3 = PromptLearnerParams(jax.random.PRNGKey(1), n_cls=3, ctx_dim=128)
    d = params3.ctx_dim
    prompts3 = assemble_prompts(
        params3.token_prefix_pos.reshape(-1, 1, d),
        params3.ctx_pos.reshape(-1, params3.n_ctx_pos, d),
        params3.token_suffix_pos.reshape(-1, params3.token_suffix_pos.shape[2], d),
        params3.token_prefix_neg.reshape(-1, 1, d),
        params3.ctx_neg.reshape(-1, params3.n_ctx_neg, d),
        params3.token_suffix_neg.reshape(-1, params3.token_suffix_neg.shape[2], d),
        vmem_budget_bytes=700_000,   # -> tp = 2 prompts/block, nb = 2
    )
    prompts3 = jax.block_until_ready(prompts3)
    ref_prompts3, _ = _reference_forward(params3)
    assert prompts3.shape == (6, 77, 128), prompts3.shape
    assert jnp.array_equal(prompts3, ref_prompts3)

    print("KERNEL_OK")
</pallas_src>

<mosaic_0001>
module attributes {stable_mosaic.version = 11 : i64} {
  func.func @_assemble_kernel(%arg0: i32, %arg1: memref<1x1x128xf32, #tpu.memory_space<vmem>>, %arg2: memref<1x8x128xf32, #tpu.memory_space<vmem>>, %arg3: memref<1x68x128xf32, #tpu.memory_space<vmem>>, %arg4: memref<1x1x128xf32, #tpu.memory_space<vmem>>, %arg5: memref<1x8x128xf32, #tpu.memory_space<vmem>>, %arg6: memref<1x68x128xf32, #tpu.memory_space<vmem>>, %arg7: memref<2x1x77x128xf32, #tpu.memory_space<vmem>>) attributes {dimension_semantics = [#tpu.dimension_semantics<arbitrary>], iteration_bounds = array<i64: 1>, scalar_prefetch = 0 : i64, scratch_operands = 0 : i64, tpu.core_type = #tpu.core_type<tc>, window_params = [{transform_indices = @transform_0, window_bounds = array<i64: 1, 1, 128>}, {transform_indices = @transform_1, window_bounds = array<i64: 1, 8, 128>}, {transform_indices = @transform_2, window_bounds = array<i64: 1, 68, 128>}, {transform_indices = @transform_3, window_bounds = array<i64: 1, 1, 128>}, {transform_indices = @transform_4, window_bounds = array<i64: 1, 8, 128>}, {transform_indices = @transform_5, window_bounds = array<i64: 1, 68, 128>}, {transform_indices = @transform_6, window_bounds = array<i64: 2, 1, 77, 128>}]} {
    %c0 = arith.constant 0 : index
    %c0_0 = arith.constant 0 : index
    %c0_1 = arith.constant 0 : index
    %0 = vector.load %arg1[%c0, %c0_0, %c0_1] : memref<1x1x128xf32, #tpu.memory_space<vmem>>, vector<1x1x128xf32>
    %c0_2 = arith.constant 0 : index
    %c0_3 = arith.constant 0 : index
    %c0_4 = arith.constant 0 : index
    %c0_5 = arith.constant 0 : index
    %1 = vector.load %arg7[%c0_2, %c0_3, %c0_4, %c0_5] : memref<2x1x77x128xf32, #tpu.memory_space<vmem>>, vector<1x1x1x128xf32>
    %2 = vector.shape_cast %1 : vector<1x1x1x128xf32> to vector<1x1x128xf32>
    %3 = vector.shape_cast %0 : vector<1x1x128xf32> to vector<1x1x1x128xf32>
    tpu.vector_store %arg7[%c0_2, %c0_3, %c0_4, %c0_5], %3 {strides = array<i32>} : memref<2x1x77x128xf32, #tpu.memory_space<vmem>>, vector<1x1x1x128xf32>,
    %c0_6 = arith.constant 0 : index
    %c0_7 = arith.constant 0 : index
    %c0_8 = arith.constant 0 : index
    %4 = vector.load %arg2[%c0_6, %c0_7, %c0_8] : memref<1x8x128xf32, #tpu.memory_space<vmem>>, vector<1x8x128xf32>
    %c0_9 = arith.constant 0 : index
    %c0_10 = arith.constant 0 : index
    %c1 = arith.constant 1 : index
    %c0_11 = arith.constant 0 : index
    %5 = vector.load %arg7[%c0_9, %c0_10, %c1, %c0_11] : memref<2x1x77x128xf32, #tpu.memory_space<vmem>>, vector<1x1x8x128xf32>
    %6 = vector.shape_cast %5 : vector<1x1x8x128xf32> to vector<1x8x128xf32>
    %7 = vector.shape_cast %4 : vector<1x8x128xf32> to vector<1x1x8x128xf32>
    tpu.vector_store %arg7[%c0_9, %c0_10, %c1, %c0_11], %7 {strides = array<i32>} : memref<2x1x77x128xf32, #tpu.memory_space<vmem>>, vector<1x1x8x128xf32>,
    %c0_12 = arith.constant 0 : index
    %c0_13 = arith.constant 0 : index
    %c0_14 = arith.constant 0 : index
    %8 = vector.load %arg3[%c0_12, %c0_13, %c0_14] : memref<1x68x128xf32, #tpu.memory_space<vmem>>, vector<1x68x128xf32>
    %c0_15 = arith.constant 0 : index
    %c0_16 = arith.constant 0 : index
    %c9 = arith.constant 9 : index
    %c0_17 = arith.constant 0 : index
    %9 = vector.load %arg7[%c0_15, %c0_16, %c9, %c0_17] : memref<2x1x77x128xf32, #tpu.memory_space<vmem>>, vector<1x1x68x128xf32>
    %10 = vector.shape_cast %9 : vector<1x1x68x128xf32> to vector<1x68x128xf32>
    %11 = vector.shape_cast %8 : vector<1x68x128xf32> to vector<1x1x68x128xf32>
    tpu.vector_store %arg7[%c0_15, %c0_16, %c9, %c0_17], %11 {strides = array<i32>} : memref<2x1x77x128xf32, #tpu.memory_space<vmem>>, vector<1x1x68x128xf32>,
    %c0_18 = arith.constant 0 : index
    %c0_19 = arith.constant 0 : index
    %c0_20 = arith.constant 0 : index
    %12 = vector.load %arg4[%c0_18, %c0_19, %c0_20] : memref<1x1x128xf32, #tpu.memory_space<vmem>>, vector<1x1x128xf32>
    %c1_21 = arith.constant 1 : index
    %c0_22 = arith.constant 0 : index
    %c0_23 = arith.constant 0 : index
    %c0_24 = arith.constant 0 : index
    %13 = vector.load %arg7[%c1_21, %c0_22, %c0_23, %c0_24] : memref<2x1x77x128xf32, #tpu.memory_space<vmem>>, vector<1x1x1x128xf32>
    %14 = vector.shape_cast %13 : vector<1x1x1x128xf32> to vector<1x1x128xf32>
    %15 = vector.shape_cast %12 : vector<1x1x128xf32> to vector<1x1x1x128xf32>
    tpu.vector_store %arg7[%c1_21, %c0_22, %c0_23, %c0_24], %15 {strides = array<i32>} : memref<2x1x77x128xf32, #tpu.memory_space<vmem>>, vector<1x1x1x128xf32>,
    %c0_25 = arith.constant 0 : index
    %c0_26 = arith.constant 0 : index
    %c0_27 = arith.constant 0 : index
    %16 = vector.load %arg5[%c0_25, %c0_26, %c0_27] : memref<1x8x128xf32, #tpu.memory_space<vmem>>, vector<1x8x128xf32>
    %c1_28 = arith.constant 1 : index
    %c0_29 = arith.constant 0 : index
    %c1_30 = arith.constant 1 : index
    %c0_31 = arith.constant 0 : index
    %17 = vector.load %arg7[%c1_28, %c0_29, %c1_30, %c0_31] : memref<2x1x77x128xf32, #tpu.memory_space<vmem>>, vector<1x1x8x128xf32>
    %18 = vector.shape_cast %17 : vector<1x1x8x128xf32> to vector<1x8x128xf32>
    %19 = vector.shape_cast %16 : vector<1x8x128xf32> to vector<1x1x8x128xf32>
    tpu.vector_store %arg7[%c1_28, %c0_29, %c1_30, %c0_31], %19 {strides = array<i32>} : memref<2x1x77x128xf32, #tpu.memory_space<vmem>>, vector<1x1x8x128xf32>,
    %c0_32 = arith.constant 0 : index
    %c0_33 = arith.constant 0 : index
    %c0_34 = arith.constant 0 : index
    %20 = vector.load %arg6[%c0_32, %c0_33, %c0_34] : memref<1x68x128xf32, #tpu.memory_space<vmem>>, vector<1x68x128xf32>
    %c1_35 = arith.constant 1 : index
    %c0_36 = arith.constant 0 : index
    %c9_37 = arith.constant 9 : index
    %c0_38 = arith.constant 0 : index
    %21 = vector.load %arg7[%c1_35, %c0_36, %c9_37, %c0_38] : memref<2x1x77x128xf32, #tpu.memory_space<vmem>>, vector<1x1x68x128xf32>
    %22 = vector.shape_cast %21 : vector<1x1x68x128xf32> to vector<1x68x128xf32>
    %23 = vector.shape_cast %20 : vector<1x68x128xf32> to vector<1x1x68x128xf32>
    tpu.vector_store %arg7[%c1_35, %c0_36, %c9_37, %c0_38], %23 {strides = array<i32>} : memref<2x1x77x128xf32, #tpu.memory_space<vmem>>, vector<1x1x68x128xf32>,
    return
  }
  func.func @transform_0(%arg0: i32) -> (i32, i32, i32) {
    %c0_i32 = arith.constant 0 : i32
    %c0_i32_0 = arith.constant 0 : i32
    %c0_i32_1 = arith.constant 0 : i32
    return %arg0, %c0_i32, %c0_i32_0 : i32, i32, i32
  }
  func.func @transform_1(%arg0: i32) -> (i32, i32, i32) {
    %c0_i32 = arith.constant 0 : i32
    %c0_i32_0 = arith.constant 0 : i32
    %c0_i32_1 = arith.constant 0 : i32
    return %arg0, %c0_i32, %c0_i32_0 : i32, i32, i32
  }
  func.func @transform_2(%arg0: i32) -> (i32, i32, i32) {
    %c0_i32 = arith.constant 0 : i32
    %c0_i32_0 = arith.constant 0 : i32
    %c0_i32_1 = arith.constant 0 : i32
    return %arg0, %c0_i32, %c0_i32_0 : i32, i32, i32
  }
  func.func @transform_3(%arg0: i32) -> (i32, i32, i32) {
    %c0_i32 = arith.constant 0 : i32
    %c0_i32_0 = arith.constant 0 : i32
    %c0_i32_1 = arith.constant 0 : i32
    return %arg0, %c0_i32, %c0_i32_0 : i32, i32, i32
  }
  func.func @transform_4(%arg0: i32) -> (i32, i32, i32) {
    %c0_i32 = arith.constant 0 : i32
    %c0_i32_0 = arith.constant 0 : i32
    %c0_i32_1 = arith.constant 0 : i32
    return %arg0, %c0_i32, %c0_i32_0 : i32, i32, i32
  }
  func.func @transform_5(%arg0: i32) -> (i32, i32, i32) {
    %c0_i32 = arith.constant 0 : i32
    %c0_i32_0 = arith.constant 0 : i32
    %c0_i32_1 = arith.constant 0 : i32
    return %arg0, %c0_i32, %c0_i32_0 : i32, i32, i32
  }
  func.func @transform_6(%arg0: i32) -> (i32, i32, i32, i32) {
    %c0_i32 = arith.constant 0 : i32
    %c0_i32_0 = arith.constant 0 : i32
    %c0_i32_1 = arith.constant 0 : i32
    %c0_i32_2 = arith.constant 0 : i32
    return %c0_i32, %arg0, %c0_i32_0, %c0_i32_1 : i32, i32, i32, i32
  }
}

</mosaic_0001>

<bundles_post_ra>
// kernel: tpu_custom_call.1
= control target key start
LH: loop header
LB: loop body
LE: loop exit
PB: predicated region body
PF: predicated region fallthrough
CT: control target
= control target key end

     0   :  { %s250_s0 = inlined_call_operand.vmem [shape: f32[1,1,128], index: 0, kind: input, shape index: {}]   ;;  %s251_s6 = inlined_call_operand.vmem [shape: f32[2,1,77,128], index: 6, kind: output, shape index: {}]   ;;  %s252_s1 = inlined_call_operand.vmem [shape: f32[1,8,128], index: 1, kind: input, shape index: {}]   ;;  %s253_s2 = inlined_call_operand.vmem [shape: f32[1,68,128], index: 2, kind: input, shape index: {}]   ;;  %s254_s3 = inlined_call_operand.vmem [shape: f32[1,1,128], index: 3, kind: input, shape index: {}]   ;;  %s255_s4 = inlined_call_operand.vmem [shape: f32[1,8,128], index: 4, kind: input, shape index: {}]   ;;  %s256_s5 = inlined_call_operand.vmem [shape: f32[1,68,128], index: 5, kind: input, shape index: {}]  }
   0x1   :  { %v23_v0 = vld [vmem:[%s250_s0] sm:$0x1]  ;;  %v28_v3 = vld [vmem:[%s253_s2 + $0x8] sm:$0xff]  ;;  %v29_v4 = vld [vmem:[%s253_s2 + $0x10] sm:$0xff] }
   0x2   :  { %v25_v1 = vld [vmem:[%s252_s1] sm:$0xff]  ;;  %24 = vst [vmem:[%s251_s6] sm:$0x1] %v23_v0  ;;  %v30_v5 = vld [vmem:[%s253_s2 + $0x18] sm:$0xff]  ;;  %37 = vst [vmem:[%s251_s6 + $0x11] sm:$0xff] %v28_v3 }
   0x3   :  { %v27_v2 = vld [vmem:[%s253_s2] sm:$0xff]  ;;  %26 = vst [vmem:[%s251_s6 + $0x1] sm:$0xff] %v25_v1  ;;  %38 = vst [vmem:[%s251_s6 + $0x19] sm:$0xff] %v29_v4  ;;  %v32_v7 = vld [vmem:[%s253_s2 + $0x28] sm:$0xff] }
   0x4   :  { %36 = vst [vmem:[%s251_s6 + $0x9] sm:$0xff] %v27_v2  ;;  %39 = vst [vmem:[%s251_s6 + $0x21] sm:$0xff] %v30_v5  ;;  %v31_v6 = vld [vmem:[%s253_s2 + $0x20] sm:$0xff]  ;;  %v33_v8 = vld [vmem:[%s253_s2 + $0x30] sm:$0xff] }
   0x5   :  { %40 = vst [vmem:[%s251_s6 + $0x29] sm:$0xff] %v31_v6  ;;  %41 = vst [vmem:[%s251_s6 + $0x31] sm:$0xff] %v32_v7  ;;  %v34_v9 = vld [vmem:[%s253_s2 + $0x38] sm:$0xff]  ;;  %v35_v10 = vld [vmem:[%s253_s2 + $0x40] sm:$0xf] }
   0x6   :  { %42 = vst [vmem:[%s251_s6 + $0x39] sm:$0xff] %v33_v8  ;;  %v45_v11 = vld [vmem:[%s254_s3] sm:$0x1]  ;;  %43 = vst [vmem:[%s251_s6 + $0x41] sm:$0xff] %v34_v9  ;;  %v51_v14 = vld [vmem:[%s256_s5 + $0x8] sm:$0xff] }
   0x7   :  { %44 = vst [vmem:[%s251_s6 + $0x49] sm:$0xf] %v35_v10  ;;  %72 = vst [vmem:[%s251_s6 + $0x50] sm:$0x1] %v45_v11  ;;  %v48_v12 = vld [vmem:[%s255_s4] sm:$0xff]  ;;  %v52_v15 = vld [vmem:[%s256_s5 + $0x10] sm:$0xff] }
   0x8   :  { %v50_v13 = vld [vmem:[%s256_s5] sm:$0xff]  ;;  %73 = vst [vmem:[%s251_s6 + $0x51] sm:$0xff] %v48_v12  ;;  %75 = vst [vmem:[%s251_s6 + $0x61] sm:$0xff] %v51_v14  ;;  %v53_v16 = vld [vmem:[%s256_s5 + $0x18] sm:$0xff] }
   0x9   :  { %74 = vst [vmem:[%s251_s6 + $0x59] sm:$0xff] %v50_v13  ;;  %v54_v17 = vld [vmem:[%s256_s5 + $0x20] sm:$0xff]  ;;  %76 = vst [vmem:[%s251_s6 + $0x69] sm:$0xff] %v52_v15  ;;  %v55_v18 = vld [vmem:[%s256_s5 + $0x28] sm:$0xff] }
   0xa   :  { %77 = vst [vmem:[%s251_s6 + $0x71] sm:$0xff] %v53_v16  ;;  %78 = vst [vmem:[%s251_s6 + $0x79] sm:$0xff] %v54_v17  ;;  %v56_v19 = vld [vmem:[%s256_s5 + $0x30] sm:$0xff]  ;;  %v57_v20 = vld [vmem:[%s256_s5 + $0x38] sm:$0xff] }
   0xb   :  { %79 = vst [vmem:[%s251_s6 + $0x81] sm:$0xff] %v55_v18  ;;  %80 = vst [vmem:[%s251_s6 + $0x89] sm:$0xff] %v56_v19  ;;  %v58_v21 = vld [vmem:[%s256_s5 + $0x40] sm:$0xf] }
   0xc   :  { %81 = vst [vmem:[%s251_s6 + $0x91] sm:$0xff] %v57_v20  ;;  %82 = vst [vmem:[%s251_s6 + $0x99] sm:$0xf] %v58_v21 }

</bundles_post_ra>
